<compile_context>
chip_gen: v7x
topology: tpu7x:2x2x1
jax: 0.10.0
libtpu: 0.0.40
codegen_flags: <defaults>
</compile_context>

<pallas_src>
import math

import jax
import jax.numpy as jnp
from jax.experimental import pallas as pl
from jax.experimental.pallas import tpu as pltpu

_TWO_PI = 2.0 * math.pi
_LANES = 128


def _round_up(x, m):
    return ((x + m - 1) // m) * m


def _random_group_matrix_kernel(u_ref, out_ref):
    # u_ref   : (3, TM, 128) float32 VMEM block -- u1, u2, u3 on leading axis
    # out_ref : (9, TM, 128) float32 VMEM block -- 9 matrix entries (row-major)
    u1 = u_ref[0]
    u2 = u_ref[1]
    u3 = u_ref[2]

    # Shoemake's method (identical formulas to the PyTorch module).
    a = jnp.sqrt(1.0 - u1)
    b = jnp.sqrt(u1)
    t2 = _TWO_PI * u2
    t3 = _TWO_PI * u3
    r = a * jnp.sin(t2)
    i = a * jnp.cos(t2)
    j = b * jnp.sin(t3)
    k = b * jnp.cos(t3)

    # The explicit q / ||q|| in the reference is a mathematical no-op:
    # ||q||^2 = (1-u1)(sin^2+cos^2) + u1(sin^2+cos^2) == 1.

    rr = r * r
    ii = i * i
    jj = j * j
    kk = k * k
    ri = r * i
    rj = r * j
    rk = r * k
    ij = i * j
    ik = i * k
    jk = j * k

    # Direct per-row stores of the 9 entries (row-major order of the 3x3).
    out_ref[0] = rr - ii - jj + kk
    out_ref[1] = 2.0 * (ri + jk)
    out_ref[2] = 2.0 * (rj - ik)
    out_ref[3] = 2.0 * (ri - jk)
    out_ref[4] = -rr + ii - jj + kk
    out_ref[5] = 2.0 * (ij + rk)
    out_ref[6] = 2.0 * (rj + ik)
    out_ref[7] = 2.0 * (ij - rk)
    out_ref[8] = -rr - ii + jj + kk


def random_group_matrices(n_like, key):
    """JAX/Pallas equivalent of RandomGroupMatrices.forward(n).

    n_like: any array; only its leading dimension N is used (like the PyTorch
            module, which only reads n.shape[0]).
    key   : PRNG key replacing torch's global RNG.
    Returns: (N, 3, 3) float32 group matrices.
    """
    N = int(n_like.shape[0])

    # quaternion index spans (sublane, lane) = (M, 128)
    m_needed = max(1, -(-N // _LANES))
    tm = min(256, _round_up(m_needed, 8))   # block sublane extent (multiple of 8)
    m_pad = _round_up(m_needed, tm)
    grid = (m_pad // tm,)

    # Uniform randoms generated host/XLA-side; streamed in lane-dense.
    u = jax.random.uniform(key, (3, m_pad, _LANES), dtype=jnp.float32)

    out = pl.pallas_call(
        _random_group_matrix_kernel,
        out_shape=jax.ShapeDtypeStruct((9, m_pad, _LANES), jnp.float32),
        grid_spec=pltpu.PrefetchScalarGridSpec(
            num_scalar_prefetch=0,
            grid=grid,
            in_specs=[pl.BlockSpec((3, tm, _LANES), lambda i: (0, i, 0))],
            out_specs=pl.BlockSpec((9, tm, _LANES), lambda i: (0, i, 0)),
        ),
        compiler_params=pltpu.CompilerParams(
            dimension_semantics=("parallel",),
        ),
    )(u)

    # (9, M, 128) -> (9, M*128) -> (9, N) -> (N, 9) -> (N, 3, 3)
    flat = out.reshape(9, m_pad * _LANES)[:, :N]
    return flat.T.reshape(N, 3, 3)


if __name__ == "__main__":
    key = jax.random.PRNGKey(0)
    key_n, key_u = jax.random.split(key)

    # The module only uses n.shape[0]; pick a small "batch" input.
    n_input = jax.random.normal(key_n, (8, 4), dtype=jnp.float32)

    mats = random_group_matrices(n_input, key_u)
    mats = jax.block_until_ready(mats)

    assert mats.shape == (8, 3, 3)
    assert mats.dtype == jnp.float32
    assert bool(jnp.all(jnp.isfinite(mats)))
    # sanity: rows of each group matrix are unit-norm (rotation-like matrix
    # from a unit quaternion) and determinant ~= 1
    row_norms = jnp.linalg.norm(mats, axis=-1)
    assert bool(jnp.all(jnp.abs(row_norms - 1.0) < 1e-4))
    dets = jnp.linalg.det(mats)
    assert bool(jnp.all(jnp.abs(jnp.abs(dets) - 1.0) < 1e-4))

    print("KERNEL_OK")
</pallas_src>

<mosaic_0001>
module attributes {stable_mosaic.version = 11 : i64} {
  func.func @_random_group_matrix_kernel(%arg0: i32, %arg1: memref<3x8x128xf32, #tpu.memory_space<vmem>>, %arg2: memref<9x8x128xf32, #tpu.memory_space<vmem>>) attributes {dimension_semantics = [#tpu.dimension_semantics<parallel>], iteration_bounds = array<i64: 1>, scalar_prefetch = 0 : i64, scratch_operands = 0 : i64, tpu.core_type = #tpu.core_type<tc>, window_params = [{transform_indices = @transform_0, window_bounds = array<i64: 3, 8, 128>}, {transform_indices = @transform_1, window_bounds = array<i64: 9, 8, 128>}]} {
    %c0 = arith.constant 0 : index
    %c0_0 = arith.constant 0 : index
    %c0_1 = arith.constant 0 : index
    %0 = vector.load %arg1[%c0, %c0_0, %c0_1] : memref<3x8x128xf32, #tpu.memory_space<vmem>>, vector<1x8x128xf32>
    %1 = vector.shape_cast %0 : vector<1x8x128xf32> to vector<8x128xf32>
    %c1 = arith.constant 1 : index
    %c0_2 = arith.constant 0 : index
    %c0_3 = arith.constant 0 : index
    %2 = vector.load %arg1[%c1, %c0_2, %c0_3] : memref<3x8x128xf32, #tpu.memory_space<vmem>>, vector<1x8x128xf32>
    %3 = vector.shape_cast %2 : vector<1x8x128xf32> to vector<8x128xf32>
    %c2 = arith.constant 2 : index
    %c0_4 = arith.constant 0 : index
    %c0_5 = arith.constant 0 : index
    %4 = vector.load %arg1[%c2, %c0_4, %c0_5] : memref<3x8x128xf32, #tpu.memory_space<vmem>>, vector<1x8x128xf32>
    %5 = vector.shape_cast %4 : vector<1x8x128xf32> to vector<8x128xf32>
    %cst = arith.constant 1.000000e+00 : f32
    %6 = vector.broadcast %cst : f32 to vector<8x128xf32>
    %7 = arith.subf %6, %1 : vector<8x128xf32>
    %8 = math.sqrt %7 : vector<8x128xf32>
    %9 = math.sqrt %1 : vector<8x128xf32>
    %cst_6 = arith.constant 6.28318548 : f32
    %10 = vector.broadcast %cst_6 : f32 to vector<8x128xf32>
    %11 = arith.mulf %10, %3 : vector<8x128xf32>
    %cst_7 = arith.constant 6.28318548 : f32
    %12 = vector.broadcast %cst_7 : f32 to vector<8x128xf32>
    %13 = arith.mulf %12, %5 : vector<8x128xf32>
    %14 = math.sin %11 : vector<8x128xf32>
    %15 = arith.mulf %8, %14 : vector<8x128xf32>
    %16 = math.cos %11 : vector<8x128xf32>
    %17 = arith.mulf %8, %16 : vector<8x128xf32>
    %18 = math.sin %13 : vector<8x128xf32>
    %19 = arith.mulf %9, %18 : vector<8x128xf32>
    %20 = math.cos %13 : vector<8x128xf32>
    %21 = arith.mulf %9, %20 : vector<8x128xf32>
    %22 = arith.mulf %15, %15 : vector<8x128xf32>
    %23 = arith.mulf %17, %17 : vector<8x128xf32>
    %24 = arith.mulf %19, %19 : vector<8x128xf32>
    %25 = arith.mulf %21, %21 : vector<8x128xf32>
    %26 = arith.mulf %15, %17 : vector<8x128xf32>
    %27 = arith.mulf %15, %19 : vector<8x128xf32>
    %28 = arith.mulf %15, %21 : vector<8x128xf32>
    %29 = arith.mulf %17, %19 : vector<8x128xf32>
    %30 = arith.mulf %17, %21 : vector<8x128xf32>
    %31 = arith.mulf %19, %21 : vector<8x128xf32>
    %32 = arith.subf %22, %23 : vector<8x128xf32>
    %33 = arith.subf %32, %24 : vector<8x128xf32>
    %34 = arith.addf %33, %25 : vector<8x128xf32>
    %c0_8 = arith.constant 0 : index
    %c0_9 = arith.constant 0 : index
    %c0_10 = arith.constant 0 : index
    %35 = vector.load %arg2[%c0_8, %c0_9, %c0_10] : memref<9x8x128xf32, #tpu.memory_space<vmem>>, vector<1x8x128xf32>
    %36 = vector.shape_cast %35 : vector<1x8x128xf32> to vector<8x128xf32>
    %37 = vector.shape_cast %34 : vector<8x128xf32> to vector<1x8x128xf32>
    tpu.vector_store %arg2[%c0_8, %c0_9, %c0_10], %37 {strides = array<i32>} : memref<9x8x128xf32, #tpu.memory_space<vmem>>, vector<1x8x128xf32>,
    %38 = arith.addf %26, %31 : vector<8x128xf32>
    %cst_11 = arith.constant 2.000000e+00 : f32
    %39 = vector.broadcast %cst_11 : f32 to vector<8x128xf32>
    %40 = arith.mulf %39, %38 : vector<8x128xf32>
    %c1_12 = arith.constant 1 : index
    %c0_13 = arith.constant 0 : index
    %c0_14 = arith.constant 0 : index
    %41 = vector.load %arg2[%c1_12, %c0_13, %c0_14] : memref<9x8x128xf32, #tpu.memory_space<vmem>>, vector<1x8x128xf32>
    %42 = vector.shape_cast %41 : vector<1x8x128xf32> to vector<8x128xf32>
    %43 = vector.shape_cast %40 : vector<8x128xf32> to vector<1x8x128xf32>
    tpu.vector_store %arg2[%c1_12, %c0_13, %c0_14], %43 {strides = array<i32>} : memref<9x8x128xf32, #tpu.memory_space<vmem>>, vector<1x8x128xf32>,
    %44 = arith.subf %27, %30 : vector<8x128xf32>
    %cst_15 = arith.constant 2.000000e+00 : f32
    %45 = vector.broadcast %cst_15 : f32 to vector<8x128xf32>
    %46 = arith.mulf %45, %44 : vector<8x128xf32>
    %c2_16 = arith.constant 2 : index
    %c0_17 = arith.constant 0 : index
    %c0_18 = arith.constant 0 : index
    %47 = vector.load %arg2[%c2_16, %c0_17, %c0_18] : memref<9x8x128xf32, #tpu.memory_space<vmem>>, vector<1x8x128xf32>
    %48 = vector.shape_cast %47 : vector<1x8x128xf32> to vector<8x128xf32>
    %49 = vector.shape_cast %46 : vector<8x128xf32> to vector<1x8x128xf32>
    tpu.vector_store %arg2[%c2_16, %c0_17, %c0_18], %49 {strides = array<i32>} : memref<9x8x128xf32, #tpu.memory_space<vmem>>, vector<1x8x128xf32>,
    %50 = arith.subf %26, %31 : vector<8x128xf32>
    %cst_19 = arith.constant 2.000000e+00 : f32
    %51 = vector.broadcast %cst_19 : f32 to vector<8x128xf32>
    %52 = arith.mulf %51, %50 : vector<8x128xf32>
    %c3 = arith.constant 3 : index
    %c0_20 = arith.constant 0 : index
    %c0_21 = arith.constant 0 : index
    %53 = vector.load %arg2[%c3, %c0_20, %c0_21] : memref<9x8x128xf32, #tpu.memory_space<vmem>>, vector<1x8x128xf32>
    %54 = vector.shape_cast %53 : vector<1x8x128xf32> to vector<8x128xf32>
    %55 = vector.shape_cast %52 : vector<8x128xf32> to vector<1x8x128xf32>
    tpu.vector_store %arg2[%c3, %c0_20, %c0_21], %55 {strides = array<i32>} : memref<9x8x128xf32, #tpu.memory_space<vmem>>, vector<1x8x128xf32>,
    %cst_22 = arith.constant 0.000000e+00 : f32
    %56 = vector.broadcast %cst_22 : f32 to vector<8x128xf32>
    %57 = arith.subf %56, %22 : vector<8x128xf32>
    %58 = arith.addf %57, %23 : vector<8x128xf32>
    %59 = arith.subf %58, %24 : vector<8x128xf32>
    %60 = arith.addf %59, %25 : vector<8x128xf32>
    %c4 = arith.constant 4 : index
    %c0_23 = arith.constant 0 : index
    %c0_24 = arith.constant 0 : index
    %61 = vector.load %arg2[%c4, %c0_23, %c0_24] : memref<9x8x128xf32, #tpu.memory_space<vmem>>, vector<1x8x128xf32>
    %62 = vector.shape_cast %61 : vector<1x8x128xf32> to vector<8x128xf32>
    %63 = vector.shape_cast %60 : vector<8x128xf32> to vector<1x8x128xf32>
    tpu.vector_store %arg2[%c4, %c0_23, %c0_24], %63 {strides = array<i32>} : memref<9x8x128xf32, #tpu.memory_space<vmem>>, vector<1x8x128xf32>,
    %64 = arith.addf %29, %28 : vector<8x128xf32>
    %cst_25 = arith.constant 2.000000e+00 : f32
    %65 = vector.broadcast %cst_25 : f32 to vector<8x128xf32>
    %66 = arith.mulf %65, %64 : vector<8x128xf32>
    %c5 = arith.constant 5 : index
    %c0_26 = arith.constant 0 : index
    %c0_27 = arith.constant 0 : index
    %67 = vector.load %arg2[%c5, %c0_26, %c0_27] : memref<9x8x128xf32, #tpu.memory_space<vmem>>, vector<1x8x128xf32>
    %68 = vector.shape_cast %67 : vector<1x8x128xf32> to vector<8x128xf32>
    %69 = vector.shape_cast %66 : vector<8x128xf32> to vector<1x8x128xf32>
    tpu.vector_store %arg2[%c5, %c0_26, %c0_27], %69 {strides = array<i32>} : memref<9x8x128xf32, #tpu.memory_space<vmem>>, vector<1x8x128xf32>,
    %70 = arith.addf %27, %30 : vector<8x128xf32>
    %cst_28 = arith.constant 2.000000e+00 : f32
    %71 = vector.broadcast %cst_28 : f32 to vector<8x128xf32>
    %72 = arith.mulf %71, %70 : vector<8x128xf32>
    %c6 = arith.constant 6 : index
    %c0_29 = arith.constant 0 : index
    %c0_30 = arith.constant 0 : index
    %73 = vector.load %arg2[%c6, %c0_29, %c0_30] : memref<9x8x128xf32, #tpu.memory_space<vmem>>, vector<1x8x128xf32>
    %74 = vector.shape_cast %73 : vector<1x8x128xf32> to vector<8x128xf32>
    %75 = vector.shape_cast %72 : vector<8x128xf32> to vector<1x8x128xf32>
    tpu.vector_store %arg2[%c6, %c0_29, %c0_30], %75 {strides = array<i32>} : memref<9x8x128xf32, #tpu.memory_space<vmem>>, vector<1x8x128xf32>,
    %76 = arith.subf %29, %28 : vector<8x128xf32>
    %cst_31 = arith.constant 2.000000e+00 : f32
    %77 = vector.broadcast %cst_31 : f32 to vector<8x128xf32>
    %78 = arith.mulf %77, %76 : vector<8x128xf32>
    %c7 = arith.constant 7 : index
    %c0_32 = arith.constant 0 : index
    %c0_33 = arith.constant 0 : index
    %79 = vector.load %arg2[%c7, %c0_32, %c0_33] : memref<9x8x128xf32, #tpu.memory_space<vmem>>, vector<1x8x128xf32>
    %80 = vector.shape_cast %79 : vector<1x8x128xf32> to vector<8x128xf32>
    %81 = vector.shape_cast %78 : vector<8x128xf32> to vector<1x8x128xf32>
    tpu.vector_store %arg2[%c7, %c0_32, %c0_33], %81 {strides = array<i32>} : memref<9x8x128xf32, #tpu.memory_space<vmem>>, vector<1x8x128xf32>,
    %cst_34 = arith.constant 0.000000e+00 : f32
    %82 = vector.broadcast %cst_34 : f32 to vector<8x128xf32>
    %83 = arith.subf %82, %22 : vector<8x128xf32>
    %84 = arith.subf %83, %23 : vector<8x128xf32>
    %85 = arith.addf %84, %24 : vector<8x128xf32>
    %86 = arith.addf %85, %25 : vector<8x128xf32>
    %c8 = arith.constant 8 : index
    %c0_35 = arith.constant 0 : index
    %c0_36 = arith.constant 0 : index
    %87 = vector.load %arg2[%c8, %c0_35, %c0_36] : memref<9x8x128xf32, #tpu.memory_space<vmem>>, vector<1x8x128xf32>
    %88 = vector.shape_cast %87 : vector<1x8x128xf32> to vector<8x128xf32>
    %89 = vector.shape_cast %86 : vector<8x128xf32> to vector<1x8x128xf32>
    tpu.vector_store %arg2[%c8, %c0_35, %c0_36], %89 {strides = array<i32>} : memref<9x8x128xf32, #tpu.memory_space<vmem>>, vector<1x8x128xf32>,
    return
  }
  func.func @transform_0(%arg0: i32) -> (i32, i32, i32) {
    %c0_i32 = arith.constant 0 : i32
    %c0_i32_0 = arith.constant 0 : i32
    %c0_i32_1 = arith.constant 0 : i32
    return %c0_i32, %arg0, %c0_i32_0 : i32, i32, i32
  }
  func.func @transform_1(%arg0: i32) -> (i32, i32, i32) {
    %c0_i32 = arith.constant 0 : i32
    %c0_i32_0 = arith.constant 0 : i32
    %c0_i32_1 = arith.constant 0 : i32
    return %c0_i32, %arg0, %c0_i32_0 : i32, i32, i32
  }
}

</mosaic_0001>

<bundles_post_ra>
// kernel: tpu_custom_call.1
= control target key start
LH: loop header
LB: loop body
LE: loop exit
PB: predicated region body
PF: predicated region fallthrough
CT: control target
= control target key end

     0   :  { %6 = vsyncpa [#allocation3], 0  ;;  %s753_s0 = inlined_call_operand.hbm [shape: f32[3,8,128], index: 0, kind: input, shape index: {}]   ;;  %s754_s1 = inlined_call_operand.hbm [shape: f32[9,8,128], index: 1, kind: output, shape index: {}]  }
   0x1   :  { %7 = vsyncpa [#allocation4], 0  ;;  %s623_s6 = smov [#allocation2]   ;;  %s575_s10 = scalar_lea.hbm %s753_s0, 384 }
   0x2   :  { %s13_s7 = sshll.u32 %s623_s6, 4  ;;  %p576_p0 = scmp.ne.s32.totalorder %s753_s0, %s575_s10  ;;  %s14_s7 = int_to_ptr.vmem [resolvable:$true] %s13_s7 }
   0x3   :  { %p579_p1 = scmp.lt.u32.totalorder %s575_s10, %s753_s0 }
   0x5   :  { %p581_p2 = pnand %p579_p1, %p576_p0 }
   0x7   :  { %584 = shalt.err (!%p581_p2)
}
   0x8   :  { %s585_s15 = scalar_lea.vmem %s14_s7, 384  ;;  %p590_p4 = scmp.lt.s32.totalorder %s14_s7, %s14_s7 }
   0x9   :  { %p586_p3 = scmp.ne.s32.totalorder %s14_s7, %s585_s15  ;;  %p591_p5 = scmp.lt.s32.totalorder %s585_s15, %s585_s15 }
   0xb   :  { %p592_p6 = por %p591_p5, %p590_p4 }
   0xd   :  { %p593_p7 = pnand %p592_p6, %p586_p3 }
   0xf   :  { %596 = shalt.err (!%p593_p7)
}
  0x10   :  { %s624_s16 = smov 128   ;;  %s625_s17 = smov 8  }
  0x11   :  { %19 = dma.hbm_to_vmem [thread:$0]  %s753_s0, 384, %s14_s7, [#allocation3], %s624_s16, %s624_s16, %s625_s17  }
  0x12   :  { %619 = dma.done.wait [#allocation3], 384  }
  0x13   :  { %620 = vsyncadd [#allocation3], 4294966912  ;;  %v25_v0 = vld [vmem:[#allocation2 + $0x8] sm:$0xff]  ;;  %v27_v1 = vld [vmem:[#allocation2 + $0x10] sm:$0xff]  ;;  %v626_v23 = vmov 683565275  }
  0x14   :  { %v658_v2 = vmul.f32 6.2831855, %v25_v0  ;;  %v660_v3 = vmul.f32 6.2831855, %v27_v1  ;;  %v627_v25 = vmov 2475754826  }
  0x15   :  { %v628_v27 = vmov 2131351028   ;;  %v629_v29 = vmov 2102212464   ;;  %v630_v31 = vmov 920167782  }
  0x16   :  { %v45_v4 = vand.u32 2147483647, %v658_v2  ;;  %v48_v5 = vand.u32 2139095040, %v658_v2  ;;  %v254_v6 = vand.u32 2147483647, %v660_v3  ;;  %v257_v7 = vand.u32 2139095040, %v660_v3 }
  0x17   :  { %v631_v39 = vmov 1326507024   ;;  %vm47_vm14 = vcmp.lt.s32.totalorder %v658_v2, 0  ;;  %s632_s0 = smov [#allocation5]  }
  0x18   :  { %v49_v8 = vshrl.u32 %v48_v5, 23  ;;  %v52_v9 = vand.u32 8388607, %v45_v4  ;;  %v258_v10 = vshrl.u32 %v257_v7, 23  ;;  %v261_v13 = vand.u32 8388607, %v254_v6 }
  0x19   :  { %vm46_vm15 = vcmp.le.f32.partialorder %v45_v4, 0.7853982  ;;  %s517_s20 = sshll.u32 %s632_s0, 4  ;;  %s518_s20 = int_to_ptr.vmem [resolvable:$true] %s517_s20 }
  0x1a   :  { %v529_v11 = vadd.s32 4294967169, %v49_v8  ;;  %v537_v12 = vadd.s32 4294967169, %v258_v10  ;;  %v53_v15 = vor.u32 8388608, %v52_v9  ;;  %v262_v18 = vor.u32 8388608, %v261_v13  ;;  %s597_s21 = scalar_lea.vmem %s518_s20, 1152  ;;  %p602_p9 = scmp.lt.s32.totalorder %s518_s20, %s518_s20 }
  0x1b   :  { %p598_p8 = scmp.ne.s32.totalorder %s518_s20, %s597_s21  ;;  %p603_p10 = scmp.lt.s32.totalorder %s597_s21, %s597_s21 }
  0x1c   :  { %v55_v14 = vadd.s32 1, %v529_v11  ;;  %v264_v16 = vadd.s32 1, %v537_v12  ;;  %v670_v21 = vshll.u32 %v53_v15, 8  ;;  %v672_v33 = vshll.u32 %v262_v18, 8 }
  0x1d   :  { %p604_p11 = por %p603_p10, %p602_p9 }
  0x1e   :  { %vm56_vm0 = vcmp.gt.s32.totalorder %v55_v14, 0  ;;  %vm265_vm1 = vcmp.gt.s32.totalorder %v264_v16, 0 }
  0x1f   :  { %v57_v17 = vsel %vm56_vm0, %v55_v14, 0  ;;  %v266_v41 = vsel %vm265_vm1, %v264_v16, 0  ;;  %vm256_vm1 = vcmp.lt.s32.totalorder %v660_v3, 0  ;;  %p605_p12 = pnand %p604_p11, %p598_p8 }
  0x20   :  { %v59_v19 = vand.u32 31, %v57_v17  ;;  %v58_v20 = vshrl.u32 %v57_v17, 5  ;;  %v268_v54 = vand.u32 31, %v266_v41  ;;  %v267_v58 = vshrl.u32 %v266_v41, 5 }
  0x22   :  { %v60_v22 = vsub.s32 32, %v59_v19  ;;  %v62_v24 = vshll.u32 %v626_v23, %v59_v19  ;;  %v65_v26 = vshll.u32 %v627_v25, %v59_v19  ;;  %v68_v28 = vshll.u32 %v628_v27, %v59_v19 }
  0x23   :  { %v71_v30 = vshll.u32 %v629_v29, %v59_v19  ;;  %v74_v32 = vshll.u32 %v630_v31, %v59_v19  ;;  %vm77_vm2 = vcmp.lt.s32.totalorder %v58_v20, 1  ;;  %vm78_vm3 = vcmp.lt.s32.totalorder %v58_v20, 2 }
  0x24   :  { %v61_v34 = vshrl.u32 %v626_v23, %v60_v22  ;;  %v63_v35 = vshrl.u32 %v627_v25, %v60_v22  ;;  %v66_v36 = vshrl.u32 %v628_v27, %v60_v22  ;;  %v69_v37 = vshrl.u32 %v629_v29, %v60_v22 }
  0x25   :  { %v72_v38 = vshrl.u32 %v630_v31, %v60_v22  ;;  %v75_v40 = vshrl.u32 %v631_v39, %v60_v22  ;;  %vm79_vm4 = vcmp.lt.s32.totalorder %v58_v20, 3  ;;  %vm80_vm5 = vcmp.lt.s32.totalorder %v58_v20, 4 }
  0x26   :  { %v64_v42 = vor.u32 %v63_v35, %v62_v24  ;;  %v67_v43 = vor.u32 %v66_v36, %v65_v26  ;;  %v70_v44 = vor.u32 %v69_v37, %v68_v28  ;;  %v269_v62 = vsub.s32 32, %v268_v54 }
  0x27   :  { %v73_v45 = vor.u32 %v72_v38, %v71_v30  ;;  %v76_v46 = vor.u32 %v75_v40, %v74_v32  ;;  %v271_v8 = vshll.u32 %v626_v23, %v268_v54  ;;  %v274_v10 = vshll.u32 %v627_v25, %v268_v54 }
  0x28   :  { %v81_v47 = vsel %vm77_vm2, %v61_v34, %v64_v42  ;;  %v82_v48 = vsel %vm80_vm5, %v70_v44, 2102212464  ;;  %v85_v49 = vsel %vm77_vm2, %v64_v42, %v67_v43  ;;  %v89_v50 = vsel %vm77_vm2, %v67_v43, %v70_v44 }
  0x29   :  { %v83_v51 = vsel %vm79_vm4, %v67_v43, %v82_v48  ;;  %v86_v52 = vsel %vm80_vm5, %v73_v45, 920167782  ;;  %v90_v53 = vsel %vm80_vm5, %v76_v46, 1326507024  ;;  %v270_v7 = vshrl.u32 %v626_v23, %v269_v62 }
  0x2a   :  { %v84_v55 = vsel %vm78_vm3, %v81_v47, %v83_v51  ;;  %v87_v56 = vsel %vm79_vm4, %v70_v44, %v86_v52  ;;  %v91_v57 = vsel %vm79_vm4, %v73_v45, %v90_v53  ;;  %v272_v9 = vshrl.u32 %v627_v25, %v269_v62 }
  0x2b   :  { %v88_v59 = vsel %vm78_vm3, %v85_v49, %v87_v56  ;;  %v92_v60 = vsel %vm78_vm3, %v89_v50, %v91_v57  ;;  %v100_v61 = vmul.u32 %v670_v21, %v84_v55  ;;  %v275_v11 = vshrl.u32 %v628_v27, %v269_v62 }
  0x2c   :  { %v680_v63 = vmul.u32.u64.low %v670_v21, %v92_v60  ;;  %v681_v0 = vmul.u32.u64.high %v670_v21, %v92_v60, %v680_v63  ;;  %v684_v1 = vmul.u32.u64.low %v670_v21, %v88_v59  ;;  %v685_v5 = vmul.u32.u64.high %v670_v21, %v88_v59, %v684_v1 }
  0x2d   :  { %v277_v12 = vshll.u32 %v628_v27, %v268_v54  ;;  %v278_v13 = vshrl.u32 %v629_v29, %v269_v62  ;;  %v280_v14 = vshll.u32 %v629_v29, %v268_v54  ;;  %v273_v15 = vor.u32 %v272_v9, %v271_v8  ;;  %v706_v63 = vld [vmem:[#allocation2] sm:$0xff] }
  0x2e   :  { %v281_v16 = vshrl.u32 %v630_v31, %v269_v62  ;;  %v283_v17 = vshll.u32 %v630_v31, %v268_v54  ;;  %v284_v18 = vshrl.u32 %v631_v39, %v269_v62  ;;  %vm102_vm6 = vc.u32 %v681_v0, %v684_v1 }
  0x2f   :  { %v103_v19 = vadd.s32 1, %v685_v5  ;;  %v276_v20 = vor.u32 %v275_v11, %v274_v10  ;;  %vm286_vm7 = vcmp.lt.s32.totalorder %v267_v58, 1  ;;  %v279_v21 = vor.u32 %v278_v13, %v277_v12 }
  0x30   :  { %v282_v22 = vor.u32 %v281_v16, %v280_v14  ;;  %v285_v24 = vor.u32 %v284_v18, %v283_v17  ;;  %vm287_vm8 = vcmp.lt.s32.totalorder %v267_v58, 2  ;;  %vm288_vm9 = vcmp.lt.s32.totalorder %v267_v58, 3 }
  0x31   :  { %v104_v23 = vsel %vm102_vm6, %v103_v19, %v685_v5  ;;  %vm289_vm10 = vcmp.lt.s32.totalorder %v267_v58, 4  ;;  %v290_v25 = vsel %vm286_vm7, %v270_v7, %v273_v15  ;;  %v294_v28 = vsel %vm286_vm7, %v273_v15, %v276_v20 }
  0x32   :  { %v105_v26 = vadd.s32 %v104_v23, %v100_v61  ;;  %v291_v27 = vsel %vm289_vm10, %v279_v21, 2102212464  ;;  %v295_v29 = vsel %vm289_vm10, %v282_v22, 920167782  ;;  %v298_v32 = vsel %vm286_vm7, %v276_v20, %v279_v21 }
  0x33   :  { %v292_v30 = vsel %vm288_vm9, %v276_v20, %v291_v27  ;;  %v296_v31 = vsel %vm288_vm9, %v279_v21, %v295_v29  ;;  %v299_v34 = vsel %vm289_vm10, %v285_v24, 1326507024  ;;  %v101_v58 = vadd.s32 %v684_v1, %v681_v0 }
  0x34   :  { %v106_v35 = vadd.s32 536870912, %v105_v26  ;;  %v297_v36 = vsel %vm287_vm8, %v294_v28, %v296_v31  ;;  %v300_v37 = vsel %vm288_vm9, %v282_v22, %v299_v34  ;;  %v293_v38 = vsel %vm287_vm8, %v290_v25, %v292_v30 }
  0x35   :  { %v301_v39 = vsel %vm287_vm8, %v298_v32, %v300_v37  ;;  %v694_v40 = vmul.u32.u64.low %v672_v33, %v297_v36  ;;  %v695_v41 = vmul.u32.u64.high %v672_v33, %v297_v36, %v694_v40  ;;  %v309_v46 = vmul.u32 %v672_v33, %v293_v38 }
  0x36   :  { %v107_v42 = vshrl.u32 %v106_v35, 30  ;;  %v698_v43 = vmul.u32.u64.low %v672_v33, %v301_v39  ;;  %v699_v44 = vmul.u32.u64.high %v672_v33, %v301_v39, %v698_v43  ;;  %v709_v10 = vsub.f32 1.0, %v706_v63 }
  0x37   :  { %v312_v47 = vadd.s32 1, %v695_v41  ;;  %vm255_vm2 = vcmp.le.f32.partialorder %v254_v6, 0.7853982  ;;  %vm137_vm10 = vweird.f32 %v658_v2 }
  0x38   :  { %v108_v45 = vshll.u32 %v107_v42, 30  ;;  %vm311_vm11 = vc.u32 %v699_v44, %v694_v40  ;;  %563 = vrsqrt.f32 %v709_v10  ;;  %v131_v16 = vsub.s32 4, %v107_v42 }
  0x39   :  { %v313_v49 = vsel %vm311_vm11, %v312_v47, %v695_v41  ;;  %v310_v17 = vadd.s32 %v694_v40, %v699_v44  ;;  %vm31_vm0 = vcmp.eq.f32.partialorder %v709_v10, inf  ;;  %vm33_vm3 = vcmp.eq.f32.partialorder %v709_v10, 0.0 }
  0x3a   :  { %v109_v48 = vsub.s32 %v105_v26, %v108_v45  ;;  %v314_v51 = vadd.s32 %v313_v49, %v309_v46  ;;  %v132_v23 = vsel %vm47_vm14, %v131_v16, %v107_v42  ;;  %v34_v45 = vand.u32 2147483648, %v709_v10 }
  0x3b   :  { %v134_v29 = vsel %vm46_vm15, 0, %v132_v23  ;;  %vm38_vm11 = vcmp.eq.f32.partialorder %v706_v63, inf }
  0x3c   :  { %v111_v50 = vsub.s32 0, %v109_v48  ;;  %v315_v53 = vadd.s32 536870912, %v314_v51  ;;  %v138_v36 = vadd.s32 3, %v134_v29  ;;  %v243_v41 = vand.u32 3, %v134_v29 }
  0x3e   :  { %v530_v52 = vmin.u32 %v111_v50, %v109_v48  ;;  %v316_v55 = vshrl.u32 %v315_v53, 30  ;;  %v139_v40 = vand.u32 3, %v138_v36  ;;  %vm248_vm5 = vcmp.eq.s32.totalorder %v243_v41, 2 }
  0x3f   :  { %vm245_vm7 = vcmp.eq.s32.totalorder %v243_v41, 0  ;;  %vm244_vm9 = vcmp.lt.s32.totalorder %v243_v41, 2 }
  0x40   :  { %v113_v54 = vclz %v530_v52  ;;  %v317_v57 = vshll.u32 %v316_v55, 30  ;;  %v340_v38 = vsub.s32 4, %v316_v55  ;;  %vm144_vm4 = vcmp.eq.s32.totalorder %v139_v40, 2 }
  0x41   :  { %vm141_vm6 = vcmp.eq.s32.totalorder %v139_v40, 0  ;;  %vm140_vm8 = vcmp.lt.s32.totalorder %v139_v40, 2 }
  0x42   :  { %v531_v56 = vadd.s32 4294967294, %v113_v54  ;;  %v318_v33 = vsub.s32 %v314_v51, %v317_v57  ;;  %v564_v35 = vpop.eup %563  ;;  %v341_v43 = vsel %vm256_vm1, %v340_v38, %v316_v55 }
  0x43   :  { %v30_v4 = vmul.f32 %v564_v35, %v709_v10  ;;  %v343_v49 = vsel %vm255_vm2, 0, %v341_v43 }
  0x44   :  { %vm532_vm12 = vcmp.lt.s32.totalorder %v531_v56, 0  ;;  %v320_v5 = vsub.s32 0, %v318_v33  ;;  %v347_v54 = vadd.s32 3, %v343_v49 }
  0x45   :  { %v116_v59 = vsel %vm532_vm12, 0, %v531_v56  ;;  %v32_v44 = vsel %vm31_vm0, %v709_v10, %v30_v4  ;;  %vm40_vm12 = vcmp.eq.f32.partialorder %v706_v63, 0.0  ;;  %v41_v10 = vand.u32 2147483648, %v706_v63 }
  0x46   :  { %v117_v60 = vsub.s32 32, %v116_v59  ;;  %v118_v61 = vshll.u32 %v109_v48, %v116_v59  ;;  %v121_v62 = vsub.s32 4294967266, %v116_v59  ;;  %v538_v9 = vmin.u32 %v320_v5, %v318_v33 }
  0x47   :  { %v35_v55 = vsel %vm33_vm3, %v34_v45, %v32_v44  ;;  %v348_v5 = vand.u32 3, %v347_v54 }
  0x48   :  { %v119_v7 = vshrl.u32 %v101_v58, %v117_v60  ;;  %v122_v8 = vadd.s32 127, %v121_v62  ;;  %v322_v13 = vclz %v538_v9 }
  0x4a   :  { %v120_v11 = vor.u32 %v119_v7, %v118_v61  ;;  %v123_v12 = vshll.u32 %v122_v8, 23  ;;  %v539_v1 = vadd.s32 4294967294, %v322_v13  ;;  %v452_v7 = vand.u32 3, %v343_v49 }
  0x4c   :  { %v124_v14 = vor.u32 4788187, %v123_v12  ;;  %v127_v0 = vcvt.s32.f32 %v120_v11  ;;  %vm540_vm13 = vcmp.lt.s32.totalorder %v539_v1, 0  ;;  %vm454_vm0 = vcmp.eq.s32.totalorder %v452_v7, 0 }
  0x4d   :  { %v325_v19 = vsel %vm540_vm13, 0, %v539_v1  ;;  %vm353_vm13 = vcmp.eq.s32.totalorder %v348_v5, 2  ;;  %vm453_vm3 = vcmp.lt.s32.totalorder %v452_v7, 2 }
  0x4e   :  { %v125_v15 = vand.u32 2147483647, %v124_v14  ;;  %v326_v20 = vsub.s32 32, %v325_v19  ;;  %v327_v21 = vshll.u32 %v318_v33, %v325_v19  ;;  %v330_v22 = vsub.s32 4294967266, %v325_v19 }
  0x50   :  { %v128_v18 = vmul.f32 %v127_v0, %v125_v15  ;;  %v328_v25 = vshrl.u32 %v310_v17, %v326_v20  ;;  %v331_v26 = vadd.s32 127, %v330_v22 }
  0x52   :  { %v129_v24 = vxor.u32 2147483648, %v128_v18  ;;  %v329_v30 = vor.u32 %v328_v25, %v327_v21  ;;  %v332_v31 = vshll.u32 %v331_v26, 23 }
  0x54   :  { %v130_v27 = vsel %vm47_vm14, %v129_v24, %v128_v18  ;;  %v333_v32 = vor.u32 4788187, %v332_v31  ;;  %v336_v34 = vcvt.s32.f32 %v329_v30  ;;  %vm457_vm14 = vcmp.eq.s32.totalorder %v452_v7, 2 }
  0x55   :  { %v133_v28 = vsel %vm46_vm15, %v658_v2, %v130_v27  ;;  %vm350_vm15 = vcmp.eq.s32.totalorder %v348_v5, 0 }
  0x56   :  { %565 = vcosq.f32 %v133_v28  ;;  %v334_v37 = vand.u32 2147483647, %v333_v32 }
  0x57   :  { %567 = vsinq.f32 %v133_v28 }
  0x58   :  { %569 = vrsqrt.f32 %v706_v63  ;;  %v337_v39 = vmul.f32 %v336_v34, %v334_v37 }
  0x5a   :  { %v338_v42 = vxor.u32 2147483648, %v337_v39 }
  0x5c   :  { %v339_v46 = vsel %vm256_vm1, %v338_v42, %v337_v39  ;;  %vm346_vm1 = vweird.f32 %v660_v3 }
  0x5d   :  { %v342_v48 = vsel %vm255_vm2, %v660_v3, %v339_v46  ;;  %vm349_vm2 = vcmp.lt.s32.totalorder %v348_v5, 2 }
  0x5e   :  { %571 = vcosq.f32 %v342_v48 }
  0x5f   :  { %573 = vsinq.f32 %v342_v48 }
  0x60   :  { %v566_v47 = vpop.eup %565 }
  0x61   :  { %v568_v50 = vpop.eup %567  ;;  %v145_v51 = vxor.u32 2147483648, %v566_v47 }
  0x62   :  { %v142_v6 = vxor.u32 2147483648, %v568_v50  ;;  %v570_v58 = vpop.eup %569 }
  0x63   :  { %v146_v52 = vsel %vm144_vm4, %v145_v51, %v568_v50  ;;  %v250_v53 = vsel %vm248_vm5, %v145_v51, %v568_v50  ;;  %v37_v8 = vmul.f32 %v570_v58, %v706_v63 }
  0x64   :  { %v143_v56 = vsel %vm141_vm6, %v566_v47, %v142_v6  ;;  %v247_v57 = vsel %vm245_vm7, %v566_v47, %v142_v6 }
  0x65   :  { %v147_v59 = vsel %vm140_vm8, %v143_v56, %v146_v52  ;;  %v251_v33 = vsel %vm244_vm9, %v247_v57, %v250_v53  ;;  %v39_v13 = vsel %vm38_vm11, %v706_v63, %v37_v8 }
  0x66   :  { %v148_v60 = vsel %vm137_vm10, nan, %v147_v59  ;;  %v252_v62 = vsel %vm137_vm10, nan, %v251_v33  ;;  %v42_v18 = vsel %vm40_vm12, %v41_v10, %v39_v13 }
  0x67   :  { %v149_v61 = vmul.f32 %v148_v60, %v35_v55  ;;  %v253_v2 = vmul.f32 %v252_v62, %v35_v55 }
  0x68   :  { %v572_v11 = vpop.eup %571 }
  0x69   :  { %v463_v9 = vmul.f32 %v149_v61, %v149_v61  ;;  %v574_v12 = vpop.eup %573  ;;  %v354_v14 = vxor.u32 2147483648, %v572_v11  ;;  %v464_v16 = vmul.f32 %v253_v2, %v253_v2  ;;  %v467_v25 = vmul.f32 %v253_v2, %v149_v61 }
  0x6a   :  { %v351_v0 = vxor.u32 2147483648, %v574_v12 }
  0x6b   :  { %v355_v1 = vsel %vm353_vm13, %v354_v14, %v574_v12  ;;  %v459_v15 = vsel %vm457_vm14, %v354_v14, %v574_v12  ;;  %v489_v17 = vsub.f32 0.0, %v463_v9  ;;  %v473_v3 = vsub.f32 %v463_v9, %v464_v16 }
  0x6c   :  { %v352_v19 = vsel %vm350_vm15, %v572_v11, %v351_v0  ;;  %v456_v20 = vsel %vm454_vm0, %v572_v11, %v351_v0 }
  0x6d   :  { %v356_v21 = vsel %vm349_vm2, %v352_v19, %v355_v1  ;;  %v460_v22 = vsel %vm453_vm3, %v456_v20, %v459_v15  ;;  %v490_v28 = vadd.f32 %v489_v17, %v464_v16  ;;  %v507_v63 = vsub.f32 %v489_v17, %v464_v16 }
  0x6e   :  { %v357_v24 = vsel %vm346_vm1, nan, %v356_v21  ;;  %v461_v23 = vsel %vm346_vm1, nan, %v460_v22 }
  0x6f   :  { %v358_v26 = vmul.f32 %v357_v24, %v42_v18  ;;  %v462_v27 = vmul.f32 %v461_v23, %v42_v18 }
  0x71   :  { %v465_v29 = vmul.f32 %v358_v26, %v358_v26  ;;  %v466_v30 = vmul.f32 %v462_v27, %v462_v27  ;;  %v472_v31 = vmul.f32 %v462_v27, %v358_v26  ;;  %v468_v32 = vmul.f32 %v358_v26, %v149_v61 }
  0x72   :  { %v471_v34 = vmul.f32 %v462_v27, %v253_v2  ;;  %v469_v35 = vmul.f32 %v462_v27, %v149_v61  ;;  %v470_v36 = vmul.f32 %v358_v26, %v253_v2 }
  0x73   :  { %v474_v37 = vsub.f32 %v473_v3, %v465_v29  ;;  %v477_v38 = vadd.f32 %v472_v31, %v467_v25  ;;  %v485_v4 = vsub.f32 %v467_v25, %v472_v31  ;;  %v491_v39 = vsub.f32 %v490_v28, %v465_v29 }
  0x74   :  { %v481_v40 = vsub.f32 %v468_v32, %v471_v34  ;;  %v495_v41 = vadd.f32 %v470_v36, %v469_v35  ;;  %v499_v42 = vadd.f32 %v471_v34, %v468_v32  ;;  %v503_v43 = vsub.f32 %v470_v36, %v469_v35 }
  0x75   :  { %v475_v44 = vadd.f32 %v474_v37, %v466_v30  ;;  %v478_v45 = vmul.f32 2.0, %v477_v38  ;;  %v486_v46 = vmul.f32 2.0, %v485_v4  ;;  %v492_v47 = vadd.f32 %v491_v39, %v466_v30 }
  0x76   :  { %v482_v48 = vmul.f32 2.0, %v481_v40  ;;  %v496_v49 = vmul.f32 2.0, %v495_v41  ;;  %v500_v50 = vmul.f32 2.0, %v499_v42  ;;  %v504_v51 = vmul.f32 2.0, %v503_v43 }
  0x77   :  { %476 = vst [vmem:[#allocation5] sm:$0xff] %v475_v44  ;;  %480 = vst [vmem:[#allocation5 + $0x8] sm:$0xff] %v478_v45  ;;  %v508_v6 = vadd.f32 %v507_v63, %v465_v29 }
  0x78   :  { %488 = vst [vmem:[#allocation5 + $0x18] sm:$0xff] %v486_v46  ;;  %494 = vst [vmem:[#allocation5 + $0x20] sm:$0xff] %v492_v47 }
  0x79   :  { %484 = vst [vmem:[#allocation5 + $0x10] sm:$0xff] %v482_v48  ;;  %498 = vst [vmem:[#allocation5 + $0x28] sm:$0xff] %v496_v49  ;;  %v509_v52 = vadd.f32 %v508_v6, %v466_v30 }
  0x7a   :  { %502 = vst [vmem:[#allocation5 + $0x30] sm:$0xff] %v500_v50  ;;  %506 = vst [vmem:[#allocation5 + $0x38] sm:$0xff] %v504_v51 }
  0x7b   :  { %511 = vst [vmem:[#allocation5 + $0x40] sm:$0xff] %v509_v52 }
  0x7c   :  { %608 = shalt.err (!%p605_p12)
}
  0x7d   :  { %s609_s24 = scalar_lea.hbm %s754_s1, 1152 }
  0x7e   :  { %p610_p13 = scmp.ne.s32.totalorder %s754_s1, %s609_s24  ;;  %p613_p0 = scmp.lt.u32.totalorder %s609_s24, %s754_s1 }
  0x80   :  { %p615_p1 = pnand %p613_p0, %p610_p13 }
  0x82   :  { %618 = shalt.err (!%p615_p1)
}
  0x83   :  { %523 = dma.vmem_to_hbm [thread:$0]  %s518_s20, 1152, %s754_s1, [#allocation4], %s624_s16, %s624_s16, %s625_s17  }
  0x84   :  { %621 = dma.done.wait [#allocation4], 1152  }
  0x85   :  { %622 = vsyncadd [#allocation4], 4294966144 }
  0x86   :  { %527 = vsyncpa [#allocation3], 1 }
  0x87   :  { %528 = vsyncpa [#allocation4], 1 }

</bundles_post_ra>
